<compile_context>
chip_gen: v6e
topology: v6e:2x2x1
jax: 0.10.0
libtpu: 0.0.40
codegen_flags: <defaults>
</compile_context>

<pallas_src>
import functools
import math

import jax
import jax.numpy as jnp
from jax.experimental import pallas as pl
from jax.experimental.pallas import tpu as pltpu


def _round_up(x, m):
    return ((x + m - 1) // m) * m


def _pick_tile(dim, max_tile, align):
    """Largest aligned tile <= max_tile that keeps zero-padding waste small."""
    max_tile = max(align, (max_tile // align) * align)
    aligned = _round_up(dim, align)
    if aligned <= max_tile:
        return aligned                       # one tile covers the whole dim, zero/min pad
    cands = []
    t = max_tile
    while t >= align:                        # pow-2 ladder of aligned candidates
        c = _round_up(t, align)
        if c not in cands:
            cands.append(c)
        t //= 2
    for c in cands:                          # largest tile with <=~12.5% padding waste
        if _round_up(dim, c) - dim <= max(dim // 8, align):
            return c
    return min(cands, key=lambda c: (_round_up(dim, c), -c))


def _mix31(x):
    """Cheap 31-bit integer mixer: shift-add 'multiplies' + xor-shifts only."""
    m31 = 0x7FFFFFFF
    x = (x + (x << 5)) & m31      # * 33
    x = x ^ (x >> 13)
    x = (x + (x << 3)) & m31      # * 9
    x = x ^ (x >> 7)
    x = (x + (x << 9)) & m31      # * 513
    x = x ^ (x >> 15)
    return x


def _features_proj_kernel(seed_ref, x_ref, w_ref, b_ref, o_ref, *,
                          training, drop_p):
    # All program_id / scalar reads hoisted out of pl.when bodies (required for
    # interpret mode; free on hardware).
    pid_i = pl.program_id(0)
    pid_j = pl.program_id(1)
    k = pl.program_id(2)
    nk = pl.num_programs(2)
    seed = seed_ref[0]

    # MXU matmul of this (tm, tk) x (tk, tn) tile; f32 accumulation.
    prod = jnp.dot(x_ref[...], w_ref[...], preferred_element_type=jnp.float32)

    @pl.when(k == 0)
    def _first():
        o_ref[...] = prod               # direct write: no zero-init + add

    @pl.when(k > 0)
    def _accum():
        o_ref[...] += prod              # output tile stays VMEM-resident over k

    # Epilogue once per output tile, on the fully reduced accumulator.
    @pl.when(k == nk - 1)
    def _finalize():
        y = o_ref[...] + b_ref[...]     # bias broadcast from [1, tn]

        if training and drop_p > 0.0:
            keep_prob = 1.0 - drop_p
            tm, tn = o_ref.shape
            m31 = 0x7FFFFFFF
            # Global row / col indices of this tile (pid_* hoisted above).
            rows = jax.lax.broadcasted_iota(jnp.int32, (tm, 1), 0) + pid_i * tm
            cols = jax.lax.broadcasted_iota(jnp.int32, (1, tn), 1) + pid_j * tn
            # Per-row / per-col mixed vectors: O(tm + tn) VALU work, not O(tm*tn).
            rh = _mix31(_mix31((rows ^ seed ^ (seed << 7)) & m31))
            ch = _mix31(_mix31((cols + ((seed ^ 0x2545F491) & m31)) & m31))
            # Per-element combine + cheap finisher (~5 int ops / element).
            h = (rh + ch) & m31
            h = h ^ (h >> 13)
            h = (h + (h << 3)) & m31    # * 9 mod 2^31 (bijective)
            h = h ^ (h >> 7)
            # keep iff hash < keep_prob * 2^31 : one integer compare, no float RNG.
            thresh = min(int(keep_prob * float(1 << 31)), (1 << 31) - 1)
            y = jnp.where(h < thresh, y * (1.0 / keep_prob), 0.0)

        # ELU (alpha = 1): exp() runs on the EUP, subtract/select on the VPU.
        # TODO(synk): jnp.expm1 would be slightly more accurate for tiny |y|;
        # exp(y)-1 is used here for guaranteed Mosaic lowering.
        o_ref[...] = jnp.where(y > 0, y, jnp.exp(y) - 1.0).astype(o_ref.dtype)


def features_proj_forward(features, weight, bias=None, *, training=False,
                          drop_p=0.3, seed=0, compute_dtype=jnp.float32,
                          tile_m=512, tile_n=1024, tile_k=1024):
    """features: [B, H]; weight: [H, O] (transposed vs PyTorch); bias: [O]."""
    B, H = features.shape
    H2, O = weight.shape
    assert H == H2, (H, H2)
    if bias is None:
        bias = jnp.zeros((O,), jnp.float32)

    cdt = jnp.dtype(compute_dtype)
    # bf16 sublane packing wants 16-row granularity on the second-minor dim.
    sub_align = 16 if cdt.itemsize == 2 else 8
    tm = _pick_tile(B, tile_m, sub_align)
    tn = _pick_tile(O, tile_n, 128)
    tk = _pick_tile(H, tile_k, 128)
    Bp, Op, Hp = _round_up(B, tm), _round_up(O, tn), _round_up(H, tk)

    # Megacore (v7x has 2 TCs): make sure at least one "parallel" axis has >=2
    # blocks; if B and O both fit a single tile, split the j (lane) axis.
    while Bp // tm == 1 and Op // tn == 1 and tn > 128:
        new_tn = _round_up(tn // 2, 128)
        if new_tn >= tn:
            break
        tn = new_tn
        Op = _round_up(O, tn)

    # Cast on the wrapper side (halves HBM/VMEM traffic for bf16), then pad to
    # lane-dense / sublane-aligned shapes.
    # TODO(synk): for repeated calls, pad + cast the (static) weight once at
    # parameter-init time instead of per forward call.
    xp = features if features.dtype == cdt else features.astype(cdt)
    wp = weight if weight.dtype == cdt else weight.astype(cdt)
    if (Bp, Hp) != (B, H):
        xp = jnp.pad(xp, ((0, Bp - B), (0, Hp - H)))
    if (Hp, Op) != (H, O):
        wp = jnp.pad(wp, ((0, Hp - H), (0, Op - O)))
    bp = bias.astype(jnp.float32).reshape(1, O)
    if Op != O:
        bp = jnp.pad(bp, ((0, 0), (0, Op - O)))

    seed_arr = jnp.array([seed], dtype=jnp.int32)
    gi, gj, gk = Bp // tm, Op // tn, Hp // tk

    kernel = functools.partial(_features_proj_kernel, training=training,
                               drop_p=drop_p)

    out = pl.pallas_call(
        kernel,
        out_shape=jax.ShapeDtypeStruct((Bp, Op), jnp.float32),
        grid_spec=pltpu.PrefetchScalarGridSpec(
            num_scalar_prefetch=1,                          # seed lands in SMEM
            grid=(gi, gj, gk),
            in_specs=[
                pl.BlockSpec((tm, tk), lambda i, j, k, s: (i, k)),
                pl.BlockSpec((tk, tn), lambda i, j, k, s: (k, j)),
                pl.BlockSpec((1, tn), lambda i, j, k, s: (0, j)),
            ],
            out_specs=pl.BlockSpec((tm, tn), lambda i, j, k, s: (i, j)),
        ),
        compiler_params=pltpu.CompilerParams(
            dimension_semantics=("parallel", "parallel", "arbitrary"),
            vmem_limit_bytes=48 * 1024 * 1024,              # headroom under v7x 64 MiB
        ),
        cost_estimate=pl.CostEstimate(
            flops=2 * Bp * Hp * Op,
            transcendentals=Bp * Op,                        # ELU exp
            bytes_accessed=(Bp * Hp * cdt.itemsize * gj     # x re-read per j block
                            + Hp * Op * cdt.itemsize * gi   # W re-read per i block
                            + Op * 4 + Bp * Op * 4),
        ),
    )(seed_arr, xp, wp, bp)

    if (Bp, Op) != (B, O):
        out = out[:B, :O]
    return out


def init_params(hid_dim, out_dim, key):
    # xavier_normal_ with gain=1.414 on a weight of shape (out_dim, hid_dim)
    gain = 1.414
    std = gain * math.sqrt(2.0 / (hid_dim + out_dim))
    w_torch_layout = std * jax.random.normal(key, (out_dim, hid_dim), dtype=jnp.float32)
    weight = w_torch_layout.T                 # [H, O] for x @ W
    bias = jnp.zeros((out_dim,), dtype=jnp.float32)
    return weight, bias


if __name__ == "__main__":
    B, HID, OUT = 16, 256, 160

    key = jax.random.PRNGKey(0)
    k_x, k_w, k_b = jax.random.split(key, 3)
    x = jax.random.normal(k_x, (B, HID), dtype=jnp.float32)
    weight, bias = init_params(HID, OUT, k_w)                     # module-faithful (bias = 0)
    bias_t = 0.1 * jax.random.normal(k_b, (OUT,), dtype=jnp.float32)  # exercises the bias add

    ref = jnp.dot(x, weight, precision=jax.lax.Precision.HIGHEST) + bias_t
    ref = jnp.where(ref > 0, ref, jnp.exp(ref) - 1.0)

    # Eval mode, auto-picked tiles (single K step; j axis split for megacore).
    out_auto = jax.block_until_ready(
        features_proj_forward(x, weight, bias_t, training=False))
    assert out_auto.shape == (B, OUT)
    assert jnp.allclose(out_auto, ref, atol=2e-2, rtol=2e-2), \
        float(jnp.max(jnp.abs(out_auto - ref)))

    # Eval mode, small explicit tiles -> real multi-step (N, K) grid with
    # in-place o_ref accumulation across K.
    out_eval = jax.block_until_ready(
        features_proj_forward(x, weight, bias_t, training=False,
                              tile_n=128, tile_k=128))
    assert jnp.allclose(out_eval, ref, atol=2e-2, rtol=2e-2), \
        float(jnp.max(jnp.abs(out_eval - ref)))

    # Training mode: in-kernel integer-threshold dropout (p = 0.3) + ELU.
    out_train = jax.block_until_ready(
        features_proj_forward(x, weight, bias, training=True, seed=123,
                              tile_n=128, tile_k=128))
    assert out_train.shape == (B, OUT)
    assert bool(jnp.all(jnp.isfinite(out_train)))
    zero_frac = float(jnp.mean(out_train == 0.0))
    assert 0.05 < zero_frac < 0.6, zero_frac      # roughly 30% of outputs dropped

    # bf16 MXU operands (cast in the wrapper); accumulation + epilogue stay f32.
    out_bf16 = jax.block_until_ready(
        features_proj_forward(x, weight, bias_t, training=False,
                              compute_dtype=jnp.bfloat16,
                              tile_n=128, tile_k=128))
    assert jnp.allclose(out_bf16, ref, atol=1e-1, rtol=1e-1)

    print("KERNEL_OK")
</pallas_src>

<mosaic_0001>
module attributes {stable_mosaic.version = 11 : i64} {
  func.func @_features_proj_kernel(%arg0: i32, %arg1: i32, %arg2: i32, %arg3: memref<1xi32, #tpu.memory_space<smem>>, %arg4: memref<16x256xf32, #tpu.memory_space<vmem>>, %arg5: memref<256x128xf32, #tpu.memory_space<vmem>>, %arg6: memref<1x128xf32, #tpu.memory_space<vmem>>, %arg7: memref<16x128xf32, #tpu.memory_space<vmem>>) attributes {dimension_semantics = [#tpu.dimension_semantics<parallel>, #tpu.dimension_semantics<parallel>, #tpu.dimension_semantics<arbitrary>], iteration_bounds = array<i64: 1, 2, 1>, scalar_prefetch = 1 : i64, scratch_operands = 0 : i64, tpu.core_type = #tpu.core_type<tc>, window_params = [{transform_indices = @transform_0, window_bounds = array<i64: 16, 256>}, {transform_indices = @transform_1, window_bounds = array<i64: 256, 128>}, {transform_indices = @transform_2, window_bounds = array<i64: 1, 128>}, {transform_indices = @transform_3, window_bounds = array<i64: 16, 128>}]} {
    %c0 = arith.constant 0 : index
    %c0_0 = arith.constant 0 : index
    %0 = vector.load %arg4[%c0, %c0_0] : memref<16x256xf32, #tpu.memory_space<vmem>>, vector<16x256xf32>
    %c0_1 = arith.constant 0 : index
    %c0_2 = arith.constant 0 : index
    %1 = vector.load %arg5[%c0_1, %c0_2] : memref<256x128xf32, #tpu.memory_space<vmem>>, vector<256x128xf32>
    %cst = arith.constant dense<0.000000e+00> : vector<16x128xf32>
    %2 = tpu.matmul %0, %1, %cst {dimension_numbers = #tpu.dot_dimension_numbers<[1], [0], [0], [1], [0, 0, 1, 1], [], []>} : vector<16x256xf32>, vector<256x128xf32>, vector<16x128xf32> -> vector<16x128xf32>
    %c0_i32 = arith.constant 0 : i32
    %3 = arith.cmpi eq, %arg2, %c0_i32 : i32
    %4 = arith.extui %3 : i1 to i32
    %c0_i32_3 = arith.constant 0 : i32
    %5 = arith.cmpi ne, %4, %c0_i32_3 : i32
    scf.if %5 {
      %c0_8 = arith.constant 0 : index
      %c0_9 = arith.constant 0 : index
      %12 = vector.load %arg7[%c0_8, %c0_9] : memref<16x128xf32, #tpu.memory_space<vmem>>, vector<16x128xf32>
      tpu.vector_store %arg7[%c0_8, %c0_9], %2 {strides = array<i32>} : memref<16x128xf32, #tpu.memory_space<vmem>>, vector<16x128xf32>,
    } else {
    }
    %c0_i32_4 = arith.constant 0 : i32
    %6 = arith.cmpi sgt, %arg2, %c0_i32_4 : i32
    %7 = arith.extui %6 : i1 to i32
    %c0_i32_5 = arith.constant 0 : i32
    %8 = arith.cmpi ne, %7, %c0_i32_5 : i32
    scf.if %8 {
      %c0_8 = arith.constant 0 : index
      %c0_9 = arith.constant 0 : index
      %12 = vector.load %arg7[%c0_8, %c0_9] : memref<16x128xf32, #tpu.memory_space<vmem>>, vector<16x128xf32>
      %13 = arith.addf %12, %2 : vector<16x128xf32>
      %c0_10 = arith.constant 0 : index
      %c0_11 = arith.constant 0 : index
      %14 = vector.load %arg7[%c0_10, %c0_11] : memref<16x128xf32, #tpu.memory_space<vmem>>, vector<16x128xf32>
      tpu.vector_store %arg7[%c0_10, %c0_11], %13 {strides = array<i32>} : memref<16x128xf32, #tpu.memory_space<vmem>>, vector<16x128xf32>,
    } else {
    }
    %c0_i32_6 = arith.constant 0 : i32
    %9 = arith.cmpi eq, %arg2, %c0_i32_6 : i32
    %10 = arith.extui %9 : i1 to i32
    %c0_i32_7 = arith.constant 0 : i32
    %11 = arith.cmpi ne, %10, %c0_i32_7 : i32
    scf.if %11 {
      %c0_8 = arith.constant 0 : index
      %c0_9 = arith.constant 0 : index
      %12 = vector.load %arg7[%c0_8, %c0_9] : memref<16x128xf32, #tpu.memory_space<vmem>>, vector<16x128xf32>
      %c0_10 = arith.constant 0 : index
      %c0_11 = arith.constant 0 : index
      %13 = vector.load %arg6[%c0_10, %c0_11] : memref<1x128xf32, #tpu.memory_space<vmem>>, vector<1x128xf32>
      %14 = vector.broadcast %13 : vector<1x128xf32> to vector<16x128xf32>
      %15 = arith.addf %12, %14 : vector<16x128xf32>
      %cst_12 = arith.constant 0.000000e+00 : f32
      %16 = vector.broadcast %cst_12 : f32 to vector<16x128xf32>
      %17 = arith.cmpf ogt, %15, %16 : vector<16x128xf32>
      %18 = math.exp %15 : vector<16x128xf32>
      %cst_13 = arith.constant 1.000000e+00 : f32
      %19 = vector.broadcast %cst_13 : f32 to vector<16x128xf32>
      %20 = arith.subf %18, %19 : vector<16x128xf32>
      %21 = arith.select %17, %15, %20 : vector<16x128xi1>, vector<16x128xf32>
      %c0_14 = arith.constant 0 : index
      %c0_15 = arith.constant 0 : index
      %22 = vector.load %arg7[%c0_14, %c0_15] : memref<16x128xf32, #tpu.memory_space<vmem>>, vector<16x128xf32>
      tpu.vector_store %arg7[%c0_14, %c0_15], %21 {strides = array<i32>} : memref<16x128xf32, #tpu.memory_space<vmem>>, vector<16x128xf32>,
    } else {
    }
    return
  }
  func.func @transform_0(%arg0: i32, %arg1: i32, %arg2: i32, %arg3: memref<1xi32, #tpu.memory_space<smem>>) -> (i32, i32) {
    %c0_i32 = arith.constant 0 : i32
    return %arg0, %arg2 : i32, i32
  }
  func.func @transform_1(%arg0: i32, %arg1: i32, %arg2: i32, %arg3: memref<1xi32, #tpu.memory_space<smem>>) -> (i32, i32) {
    %c0_i32 = arith.constant 0 : i32
    return %arg2, %arg1 : i32, i32
  }
  func.func @transform_2(%arg0: i32, %arg1: i32, %arg2: i32, %arg3: memref<1xi32, #tpu.memory_space<smem>>) -> (i32, i32) {
    %c0_i32 = arith.constant 0 : i32
    %c0_i32_0 = arith.constant 0 : i32
    return %c0_i32, %arg1 : i32, i32
  }
  func.func @transform_3(%arg0: i32, %arg1: i32, %arg2: i32, %arg3: memref<1xi32, #tpu.memory_space<smem>>) -> (i32, i32) {
    %c0_i32 = arith.constant 0 : i32
    return %arg0, %arg1 : i32, i32
  }
}

</mosaic_0001>

<bundles_post_ra>
// kernel: tpu_custom_call.1
= control target key start
LH: loop header
LB: loop body
LE: loop exit
PB: predicated region body
PF: predicated region fallthrough
CT: control target
= control target key end

     0   :  { %10 = vsyncpa [#allocation5], 0  ;;  %s1110_s0 = inlined_call_operand.<no memory space> [shape: s32[1], index: 0, kind: input, shape index: {}]   ;;  %s1111_s1 = inlined_call_operand.hbm [shape: f32[16,256], index: 1, kind: input, shape index: {}]   ;;  %s1112_s2 = inlined_call_operand.hbm [shape: f32[256,256], index: 2, kind: input, shape index: {}]   ;;  %s1113_s3 = inlined_call_operand.vmem [shape: f32[1,256], index: 3, kind: input, shape index: {}]   ;;  %s1114_s4 = inlined_call_operand.hbm [shape: f32[16,256], index: 4, kind: output, shape index: {}]  }
   0x1   :  { %11 = vsyncpa [#allocation8], 0 }
   0x2   :  { %13 = vsyncpa [#allocation8 + $0x1], 0 }
   0x3   :  { %14 = vsyncpa [#allocation6], 0 }
   0x4   :  { %16 = vsyncpa [#allocation6 + $0x1], 0  ;;  %s892_s15 = smov 0   ;;  %s894_s0 = smov 0  }
   0x5   :  { %s896_s16 = smov 0   ;;  %s898_s17 = smov 0  }
   0x6   :  { %s900_s18 = smov 0   ;;  %s902_s19 = smov 0  }
   0x7 LB: > { %1120 = sst [smem:[#allocation13_spill]] %s855_s19  ;;  %s545_s20 = sadd.s32 4294967295, %s855_s19   ;;  %s855_s19 = sphi %s902_s19, %s22_s19   ;;  %s851_s18 = sphi %s900_s18, %s1140_s18   ;;  %s847_s17 = sphi %s898_s17, %s1139_s17   ;;  %s843_s16 = sphi %s896_s16, %s1138_s16   ;;  %s839_s0 = sphi %s894_s0, %s1137_s0   ;;  %s835_s15 = sphi %s892_s15, %s1136_s15  }
   0x8   : > { %s546_s21 = sadd.s32 4294967294, %s855_s19   ;;  %p85_p0 = scmp.ne.s32.totalorder %s843_s16, %s839_s0 }
   0x9   : > { %p86_p1 = scmp.eq.s32.totalorder %s855_s19, 0  ;;  %p91_p2 = scmp.ne.s32.totalorder %s839_s0, %s835_s15 }
   0xa   : > { %p929_p3 = scmp.eq.s32.totalorder %s545_s20, 0  ;;  %p143_p5 = scmp.eq.s32.totalorder %s545_s20, 1 }
   0xb   : > { %p933_p4 = por %p86_p1, %p85_p0  ;;  %p149_p7 = scmp.eq.s32.totalorder %s546_s21, 1 }
   0xc   : > { %p939_p6 = por %p929_p3, %p91_p2  ;;  %p943_p8 = por %p143_p5, %p85_p0 }
   0xd   : > { %p547_p9 = scmp.ge.s32.totalorder %s855_s19, 1  ;;  %p948_p10 = por %p149_p7, %p91_p2 }
   0xe   : > { %s1123_s24 = scalar_select %p939_p6, 1, 0 }
   0xf   : > { %s1124_s25 = scalar_select %p943_p8, 1, 0 }
  0x10   : > { %s1125_s26 = scalar_select %p948_p10, 1, 0 }
  0x11   : > { %p156_p11 = scmp.lt.s32.totalorder %s855_s19, 3  ;;  %s857_s28 = smov [#allocation4]  }
  0x12   : > { %1126 = sst [smem:[#allocation14_spill]] %s1125_s26  ;;  %s174_s29 = sshll.u32 %s857_s28, 4  ;;  %s175_s29 = int_to_ptr.vmem [resolvable:$true] %s174_s29 }
  0x13   : > { %p953_p12 = pnand %p547_p9, %p156_p11  ;;  %p654_p1 = scmp.lt.s32.totalorder %s855_s19, 2 }
  0x14   : > { %s37_s6 = sadd.s32 1, %s851_s18  ;;  %s728_s7 = scalar_lea.vmem %s175_s29, 512 }
  0x15   : > { %p641_p13 = pneg %p953_p12  ;;  %p969_p2 = pnand %p654_p1, %p933_p4 }
  0x16   : > { %p729_p9 = scmp.ne.s32.totalorder %s175_s29, %s728_s7  ;;  %p736_p0 = scmp.lt.s32.totalorder %s175_s29, %s175_s29 }
  0x17   : > { %p963_p5 = pnand %p641_p13, %p929_p3  ;;  %p737_p8 = scmp.lt.s32.totalorder %s728_s7, %s728_s7 }
  0x19   : > { %p719_p7 = pneg %p963_p5  ;;  %p738_p6 = por %p737_p8, %p736_p0 }
  0x1b   : > { %p731_p11 = pnand %p729_p9, %p719_p7 }
  0x1d   : > { %p732_p10 = pneg %p731_p11 }
  0x1f   : > { %p739_p13 = pnand %p738_p6, %p732_p10 }
  0x21   : > { %742 = shalt.err (!%p739_p13)
}
  0x22   : > { %s858_s8 = smov 256   ;;  %s859_s9 = smov 16  }
  0x23   : > { %644 = dma.hbm_to_vmem [thread:$0]  (!%p963_p5), %s1111_s1, 512, %s175_s29, [#allocation5], %s858_s8, %s858_s8, %s859_s9  }
  0x24   : > { %p39_p4 = scmp.ge.s32.totalorder %s37_s6, 2  ;;  %s78_s12 = sadd.s32 1, %s843_s16 }
  0x25   : > { %s188_s13 = sand.u32 1, %s843_s16   ;;  %s551_s21 = sshll.u32 %s851_s18, 7 }
  0x26   : > { %s1142_s6 = smov (%p39_p4, %s37_s6), 0  ;;  %s550_s14 = sshll.u32 %s188_s13, 8 }
  0x27   : > { %s74_s20 = ssub.s32 %s851_s18, %s1142_s6  ;;  %s200_s30 = scalar_lea.hbm %s1112_s2, %s551_s21 }
  0x28   : > { %p76_p6 = scmp.eq.s32.totalorder %s74_s20, 0  ;;  %s192_s7 = scalar_lea.vmem [#allocation7], %s550_s14 }
  0x29   : > { %s201_s19 = sshll.u32 %s192_s7, 4  ;;  %s189_s29 = scalar_lea.sflag [#allocation8], %s188_s13  ;;  %s202_s19 = int_to_ptr.vmem [resolvable:$true] %s201_s19 }
  0x2a   : > { %s994_s26 = scalar_select %p76_p6, %s843_s16, %s78_s12  }
  0x2b   : > { %p745_p8 = pneg %p969_p2  ;;  %s756_s9 = scalar_lea.vmem %s202_s19, 4096 }
  0x2c   : > { %p757_p10 = scmp.ne.s32.totalorder %s202_s19, %s756_s9  ;;  %s860_s10 = smov [#allocation7]  }
  0x2d   : > { %s761_s11 = sshll.u32 %s860_s10, 4  ;;  %s762_s11 = int_to_ptr.vmem [resolvable:$false] %s761_s11 }
  0x2e   : > { %p759_p0 = pnand %p757_p10, %p745_p8  ;;  %s763_s20 = scalar_lea.vmem %s762_s11, 8192 }
  0x2f   : > { %p764_p5 = scmp.lt.s32.totalorder %s202_s19, %s762_s11  ;;  %p765_p7 = scmp.lt.s32.totalorder %s763_s20, %s756_s9 }
  0x30   : > { %p760_p1 = pneg %p759_p0 }
  0x31   : > { %p766_p9 = por %p765_p7, %p764_p5 }
  0x33   : > { %p767_p11 = pnand %p766_p9, %p760_p1 }
  0x35   : > { %770 = shalt.err (!%p767_p11)
}
  0x36   : > { %s861_s14 = smov 128   ;;  %s862_s12 = smov 8  }
  0x37   : > { %648 = dma.hbm_to_vmem [thread:$0]  (!%p969_p2), %s200_s30, 4096, %s202_s19, %s189_s29, %s858_s8, %s861_s14, %s862_s12  }
  0x38   : > { %219 = sbr.rel (%p953_p12) target bundleno = 334 (0x14e), region = 32 }
  0x3d   : > { %822 = dma.done.wait (%p929_p3), [#allocation5], 512  }
  0x3e   : > { %824 = vsyncadd (%p929_p3), [#allocation5], 4294966784  ;;  %s1008_s13 = sand.u32 1, %s839_s0   ;;  %p1130_p2 = scmp.ne.s32.totalorder %s1123_s24, 0 }
  0x3f   : > { %s554_s21 = sshll.u32 %s1008_s13, 8  ;;  %s226_s23 = scalar_lea.sflag [#allocation8], %s1008_s13 }
  0x40   : > { %s1012_s5 = scalar_lea.vmem [#allocation7], %s554_s21 }
  0x41   : > { %826 = dma.done.wait (%p1130_p2), %s226_s23, 4096  }
  0x42   : > { %828 = vsyncadd (%p1130_p2), %s226_s23, 4294963200  ;;  %v297_v0 = vld [vmem:[%s1012_s5 + $0xf8] sm:$0xff]  ;;  %v296_v2 = vld [vmem:[%s1012_s5 + $0xf0] sm:$0xff]  ;;  %p258_p3 = scmp.lt.s32.totalorder %s847_s17, 1  ;;  %s555_s8 = sshll.u32 %s1008_s13, 4 }
  0x43   : > { %v281_v1 = vld [vmem:[%s1012_s5 + $0x78] sm:$0xff]  ;;  %563 = vmatprep.subr.mxu0 %v297_v0  ;;  %601 = vmatprep.subr.mxu1 %v297_v0  ;;  %v280_v3 = vld [vmem:[%s1012_s5 + $0x70] sm:$0xff]  ;;  %v295_v4 = vld [vmem:[%s1012_s5 + $0xe8] sm:$0xff]  ;;  %s560_s28 = sshll.u32 %s847_s17, 7  ;;  %s254_s30 = scalar_lea.vmem [#allocation9], %s555_s8 }
  0x44   : > { %564 = vmatpush3.msra.mxu0 %v281_v1  ;;  %617 = vmatpush3.msra.mxu1 %v281_v1  ;;  %v279_v5 = vld [vmem:[%s1012_s5 + $0x68] sm:$0xff]  ;;  %v294_v6 = vld [vmem:[%s1012_s5 + $0xe0] sm:$0xff]  ;;  %v293_v8 = vld [vmem:[%s1012_s5 + $0xd8] sm:$0xff]  ;;  %s259_s19 = scalar_select %p258_p3, %s847_s17, 1 }
  0x45   : > { %565 = vmatprep.subr.mxu0 %v296_v2  ;;  %602 = vmatprep.subr.mxu1 %v296_v2  ;;  %v278_v7 = vld [vmem:[%s1012_s5 + $0x60] sm:$0xff]  ;;  %v277_v9 = vld [vmem:[%s1012_s5 + $0x58] sm:$0xff]  ;;  %v292_v10 = vld [vmem:[%s1012_s5 + $0xd0] sm:$0xff]  ;;  %s431_s7 = sshll.u32 %s254_s30, 4  ;;  %s1060_s10 = scalar_lea.hbm %s1114_s4, %s560_s28  ;;  %s1062_s7 = int_to_ptr.vmem [resolvable:$true] %s431_s7 }
  0x46   : > { %566 = vmatpush3.msra.mxu0 %v280_v3  ;;  %618 = vmatpush3.msra.mxu1 %v280_v3  ;;  %v276_v11 = vld [vmem:[%s1012_s5 + $0x50] sm:$0xff]  ;;  %v291_v12 = vld [vmem:[%s1012_s5 + $0xc8] sm:$0xff]  ;;  %v290_v14 = vld [vmem:[%s1012_s5 + $0xc0] sm:$0xff]  ;;  %s260_s27 = scalar_lea.vmem %s1113_s3, %s259_s19  ;;  %s416_s17 = scalar_lea.sflag [#allocation6], %s1008_s13 }
  0x47   : > { %567 = vmatprep.subr.mxu0 %v295_v4  ;;  %603 = vmatprep.subr.mxu1 %v295_v4  ;;  %v275_v13 = vld [vmem:[%s1012_s5 + $0x48] sm:$0xff]  ;;  %v274_v15 = vld [vmem:[%s1012_s5 + $0x40] sm:$0xff]  ;;  %v289_v16 = vld [vmem:[%s1012_s5 + $0xb8] sm:$0xff]  ;;  %s771_s11 = scalar_lea.vmem %s1062_s7, 256  ;;  %p1131_p13 = scmp.ne.s32.totalorder %s1124_s25, 0 }
  0x48   : > { %568 = vmatpush3.msra.mxu0 %v279_v5  ;;  %619 = vmatpush3.msra.mxu1 %v279_v5  ;;  %v273_v17 = vld [vmem:[%s1012_s5 + $0x38] sm:$0xff]  ;;  %v288_v18 = vld [vmem:[%s1012_s5 + $0xb0] sm:$0xff]  ;;  %v287_v20 = vld [vmem:[%s1012_s5 + $0xa8] sm:$0xff]  ;;  %p772_p12 = scmp.ne.s32.totalorder %s1062_s7, %s771_s11  ;;  %s863_s20 = smov [#allocation9]  }
  0x49   : > { %569 = vmatprep.subr.mxu0 %v294_v6  ;;  %604 = vmatprep.subr.mxu1 %v294_v6  ;;  %v272_v19 = vld [vmem:[%s1012_s5 + $0x30] sm:$0xff]  ;;  %v271_v21 = vld [vmem:[%s1012_s5 + $0x28] sm:$0xff]  ;;  %v286_v22 = vld [vmem:[%s1012_s5 + $0xa0] sm:$0xff]  ;;  %s775_s14 = sshll.u32 %s863_s20, 4  ;;  %s776_s14 = int_to_ptr.vmem [resolvable:$false] %s775_s14 }
  0x4a   : > { %570 = vmatpush3.msra.mxu0 %v278_v7  ;;  %620 = vmatpush3.msra.mxu1 %v278_v7  ;;  %v270_v23 = vld [vmem:[%s1012_s5 + $0x20] sm:$0xff]  ;;  %v285_v24 = vld [vmem:[%s1012_s5 + $0x98] sm:$0xff]  ;;  %v284_v26 = vld [vmem:[%s1012_s5 + $0x90] sm:$0xff]  ;;  %p773_p4 = pnand %p772_p12, %p1131_p13  ;;  %s777_s12 = scalar_lea.vmem %s776_s14, 512 }
  0x4b   : > { %571 = vmatprep.subr.mxu0 %v293_v8  ;;  %605 = vmatprep.subr.mxu1 %v293_v8  ;;  %v269_v25 = vld [vmem:[%s1012_s5 + $0x18] sm:$0xff]  ;;  %v268_v27 = vld [vmem:[%s1012_s5 + $0x10] sm:$0xff]  ;;  %v283_v28 = vld [vmem:[%s1012_s5 + $0x88] sm:$0xff]  ;;  %p778_p8 = scmp.lt.s32.totalorder %s1062_s7, %s776_s14  ;;  %p779_p10 = scmp.lt.s32.totalorder %s777_s12, %s771_s11 }
  0x4c   : > { %572 = vmatpush3.msra.mxu0 %v277_v9  ;;  %621 = vmatpush3.msra.mxu1 %v277_v9  ;;  %v267_v29 = vld [vmem:[%s1012_s5 + $0x8] sm:$0xff]  ;;  %v282_v30 = vld [vmem:[%s1012_s5 + $0x80] sm:$0xff]  ;;  %v265_v33 = vld [vmem:[#allocation4 + $0x18] sm:$0xff]  ;;  %p774_p6 = pneg %p773_p4 }
  0x4d   : > { %573 = vmatprep.subr.mxu0 %v292_v10  ;;  %606 = vmatprep.subr.mxu1 %v292_v10  ;;  %v266_v31 = vld [vmem:[%s1012_s5] sm:$0xff]  ;;  %v263_v32 = vld [vmem:[#allocation4 + $0x8] sm:$0xff]  ;;  %v264_v35 = vld [vmem:[#allocation4 + $0x10] sm:$0xff]  ;;  %p780_p0 = por %p779_p10, %p778_p8 }
  0x4e   : > { %574 = vmatpush3.msra.mxu0 %v276_v11  ;;  %622 = vmatpush3.msra.mxu1 %v276_v11  ;;  %v262_v34 = vld [vmem:[#allocation4] sm:$0xff] }
  0x4f   : > { %575 = vmatprep.subr.mxu0 %v291_v12  ;;  %607 = vmatprep.subr.mxu1 %v291_v12  ;;  %v556_v39 = vld [vmem:[%s260_s27] ss:$0 sm:$0xff]  ;;  %p781_p1 = pnand %p780_p0, %p774_p6 }
  0x50   : > { %576 = vmatpush3.msra.mxu0 %v275_v13  ;;  %623 = vmatpush3.msra.mxu1 %v275_v13 }
  0x51   : > { %577 = vmatprep.subr.mxu0 %v290_v14  ;;  %608 = vmatprep.subr.mxu1 %v290_v14 }
  0x52   : > { %578 = vmatpush3.msra.mxu0 %v274_v15  ;;  %624 = vmatpush3.msra.mxu1 %v274_v15 }
  0x53   : > { %579 = vmatprep.subr.mxu0 %v289_v16  ;;  %609 = vmatprep.subr.mxu1 %v289_v16 }
  0x54   : > { %580 = vmatpush3.msra.mxu0 %v273_v17  ;;  %625 = vmatpush3.msra.mxu1 %v273_v17 }
  0x55   : > { %581 = vmatprep.subr.mxu0 %v288_v18  ;;  %610 = vmatprep.subr.mxu1 %v288_v18 }
  0x56   : > { %582 = vmatpush3.msra.mxu0 %v272_v19  ;;  %626 = vmatpush3.msra.mxu1 %v272_v19 }
  0x57   : > { %583 = vmatprep.subr.mxu0 %v287_v20  ;;  %611 = vmatprep.subr.mxu1 %v287_v20 }
  0x58   : > { %584 = vmatpush3.msra.mxu0 %v271_v21  ;;  %627 = vmatpush3.msra.mxu1 %v271_v21 }
  0x59   : > { %585 = vmatprep.subr.mxu0 %v286_v22  ;;  %612 = vmatprep.subr.mxu1 %v286_v22 }
  0x5a   : > { %586 = vmatpush3.msra.mxu0 %v270_v23  ;;  %628 = vmatpush3.msra.mxu1 %v270_v23 }
  0x5b   : > { %587 = vmatprep.subr.mxu0 %v285_v24  ;;  %613 = vmatprep.subr.mxu1 %v285_v24 }
  0x5c   : > { %588 = vmatpush3.msra.mxu0 %v269_v25  ;;  %629 = vmatpush3.msra.mxu1 %v269_v25 }
  0x5d   : > { %589 = vmatprep.subr.mxu0 %v284_v26  ;;  %614 = vmatprep.subr.mxu1 %v284_v26 }
  0x5e   : > { %590 = vmatpush3.msra.mxu0 %v268_v27  ;;  %630 = vmatpush3.msra.mxu1 %v268_v27 }
  0x5f   : > { %591 = vmatprep.subr.mxu0 %v283_v28  ;;  %615 = vmatprep.subr.mxu1 %v283_v28 }
  0x60   : > { %592 = vmatpush3.msra.mxu0 %v267_v29  ;;  %631 = vmatpush3.msra.mxu1 %v267_v29 }
  0x61   : > { %593 = vmatprep.subr.mxu0 %v282_v30  ;;  %616 = vmatprep.subr.mxu1 %v282_v30 }
  0x62   : > { %594 = vmatpush3.msra.mxu0 %v266_v31  ;;  %632 = vmatpush3.msra.mxu1 %v266_v31 }
  0x63   : > { %362 = vmatprep.mubr.f32.mxu0 %v263_v32  ;;  %367 = vmatprep.mubr.f32.mxu1 %v265_v33 }
  0x64   : > { %363 = vmatmul.mubr.f32.vlgmr.msra.gmra.mxu0 %v262_v34  ;;  %368 = vmatmul.mubr.f32.vlgmr.msra.gmra.mxu1 %v264_v35 }
 0x124   : > { %v595_v36 = vpop.f32.mrf.mxu0  ;;  %v598_v37 = vpop.f32.mrf.mxu1 }
 0x126   : > { %v596_v38 = vpop.f32.mrf.mxu0  ;;  %v599_v40 = vpop.f32.mrf.mxu1 }
 0x127   : > { %v597_v41 = vadd.f32 %v596_v38, %v595_v36  ;;  %v600_v42 = vadd.f32 %v599_v40, %v598_v37 }
 0x129   : > { %v401_v43 = vadd.f32 %v597_v41, %v556_v39  ;;  %v402_v44 = vadd.f32 %v600_v42, %v556_v39 }
 0x12b   : > { %v405_v45 = vmul.f32 1.442695, %v401_v43  ;;  %v407_v46 = vmul.f32 1.442695, %v402_v44  ;;  %vm403_vm0 = vcmp.gt.f32.partialorder %v401_v43, 0.0  ;;  %vm404_vm1 = vcmp.gt.f32.partialorder %v402_v44, 0.0 }
 0x12d   : > { %713 = vpow2.f32 %v405_v45 }
 0x12e   : > { %715 = vpow2.f32 %v407_v46 }
 0x13a   : > { %v714_v47 = vpop.eup %713 }
 0x13b   : > { %v716_v48 = vpop.eup %715  ;;  %v557_v49 = vadd.f32 -1.0, %v714_v47 }
 0x13c   : > { %v558_v50 = vadd.f32 -1.0, %v716_v48 }
 0x13d   : > { %v411_v51 = vsel %vm403_vm0, %v401_v43, %v557_v49 }
 0x13e   : > { %413 = vst [vmem:[%s254_s30] sm:$0xff] %v411_v51  ;;  %v412_v52 = vsel %vm404_vm1, %v402_v44, %v558_v50 }
 0x13f   : > { %414 = vst [vmem:[%s254_s30 + $0x8] sm:$0xff] %v412_v52 }
 0x140   : > { %784 = shalt.err (!%p781_p1)
}
 0x141   : > { %s785_s21 = scalar_lea.hbm %s1060_s10, 256  ;;  %s789_s19 = scalar_lea.hbm %s1114_s4, 512 }
 0x142   : > { %p786_p5 = scmp.ne.s32.totalorder %s1060_s10, %s785_s21  ;;  %p790_p11 = scmp.lt.s32.totalorder %s1060_s10, %s1114_s4 }
 0x143   : > { %p791_p2 = scmp.lt.s32.totalorder %s789_s19, %s785_s21 }
 0x144   : > { %p787_p7 = pnand %p786_p5, %p1131_p13 }
 0x145   : > { %p792_p3 = por %p791_p2, %p790_p11 }
 0x146   : > { %p788_p9 = pneg %p787_p7 }
 0x148   : > { %p793_p12 = pnand %p792_p3, %p788_p9 }
 0x14a   : > { %796 = shalt.err (!%p793_p12)
}
 0x14b   : > { %s864_s27 = smov 128   ;;  %s865_s8 = smov 256  }
 0x14c   : > { %s866_s28 = smov 8  }
 0x14d   : > { %639 = dma.vmem_to_hbm [thread:$0]  (%p1131_p13), %s1062_s7, 256, %s1060_s10, %s416_s17, %s864_s27, %s865_s8, %s866_s28  }
 0x14e PF: > { %s1132_s30 = sld [smem:[#allocation14_spill]]  ;;  %s446_s9 = sand.u32 1, %s835_s15  }
 0x14f   : > { %s1133_s29 = sld [smem:[#allocation13_spill]]  ;;  %s447_s11 = scalar_lea.sflag [#allocation6], %s446_s9 }
 0x154   : > { %p1134_p4 = scmp.ne.s32.totalorder %s1132_s30, 0 }
 0x155   : > { %p1135_p6 = scmp.ge.s32.totalorder %s1133_s29, 2 }
 0x157   : > { %p650_p8 = pnand %p1135_p6, %p1134_p4 }
 0x159   : > { %p651_p10 = pneg %p650_p8 }
 0x15b   : > { %830 = dma.done.wait (%p651_p10), %s447_s11, 256  }
 0x15c   : > { %832 = vsyncadd (%p651_p10), %s447_s11, 4294967040  ;;  %s22_s19 = sadd.s32 1, %s1133_s29   ;;  %s1136_s15 = smov %s839_s0 }
 0x15d   : > { %p19_p0 = scmp.ge.s32.totalorder %s22_s19, 4   ;;  %s1137_s0 = smov %s843_s16 }
 0x15e   : > { %s1138_s16 = smov %s994_s26  ;;  %s1139_s17 = smov %s851_s18 }
 0x15f   : > { %s1140_s18 = smov %s1142_s6  ;;  %21 = sbr.rel (!%p19_p0) target bundleno = 7 (0x7), region = 98 }
 0x164   :  { %452 = vsyncpa [#allocation5], 1 }
 0x165   :  { %454 = vsyncpa [#allocation5 + $0x1], 1 }
 0x166   :  { %455 = vsyncpa [#allocation8], 1 }
 0x167   :  { %457 = vsyncpa [#allocation8 + $0x1], 1 }
 0x168   :  { %458 = vsyncpa [#allocation6], 1 }
 0x169   :  { %460 = vsyncpa [#allocation6 + $0x1], 1 }

</bundles_post_ra>
